<compile_context>
chip_gen: v7x
topology: tpu7x:2x2x1
jax: 0.10.0
libtpu: 0.0.40
codegen_flags: <defaults>
</compile_context>

<pallas_src>
import math

import jax
import jax.numpy as jnp
from jax.experimental import pallas as pl
from jax.experimental.pallas import tpu as pltpu


def _round_up(x, m):
    return (x + m - 1) // m * m


def _pad2(a, rows, cols):
    """Zero-pad a 2-D array up to (rows, cols)."""
    return jnp.zeros((rows, cols), a.dtype).at[: a.shape[0], : a.shape[1]].set(a)


# ----------------------------- Pallas kernel --------------------------------
def _make_kernel(n_users_pad):
    """Kernel closure over the static user-block offset inside HUM."""

    def kernel(ids_ref, hum_ref, b1_ref, w2_ref, sc_ref, out_ref):
        # ids: (2, TB) int32 — row 0 user ids, row 1 movie ids, batch on lanes.
        uids = ids_ref[0:1, :]                         # (1, TB)
        mids = ids_ref[1:2, :] + n_users_pad           # (1, TB), offset into HM block
        k = hum_ref.shape[-1]                          # NUp + NMp (static)
        tb = uids.shape[-1]

        # Combined "two-hot": each column has a 1 at its user row and a 1 at
        # its (offset) movie row.  Exact in bf16.
        rows = jax.lax.broadcasted_iota(jnp.int32, (k, tb), 0)
        twohot = ((rows == uids) | (rows == mids)).astype(hum_ref.dtype)   # (K, TB)

        # Single MXU push: h_pre = HU[:, uid] + HM[:, mid] for every lane.
        hT = jnp.dot(hum_ref[...], twohot,
                     preferred_element_type=jnp.float32)                   # (Hp, TB)
        hT = jnp.maximum(hT + b1_ref[...], 0.0)                            # ReLU

        # Output layer: VPU multiply + tiny sublane reduce (Hp = 16).
        z = jnp.sum(hT * w2_ref[...], axis=0, keepdims=True) + sc_ref[0]   # (1, TB)

        # Exact sigmoid (EUP exp + divide) and fused minmax rescale.
        p = 1.0 / (1.0 + jnp.exp(-z))
        out_ref[...] = p * sc_ref[1] + sc_ref[2]

    return kernel


def _mlp_pallas(packed, ids, scalars, block_b):
    """ids: (2, B_pad) int32.  Returns (1, B_pad) float32 scores."""
    b_pad = ids.shape[1]
    tb = min(block_b, b_pad)
    grid = (b_pad // tb,)

    hp, k = packed["hum"].shape
    kernel = _make_kernel(packed["n_users_pad"])

    return pl.pallas_call(
        kernel,
        out_shape=jax.ShapeDtypeStruct((1, b_pad), jnp.float32),
        grid=grid,
        in_specs=[
            pl.BlockSpec((2, tb), lambda i: (0, i)),             # packed ids (streamed)
            pl.BlockSpec((hp, k), lambda i: (0, 0)),             # HU|HM (resident, bf16)
            pl.BlockSpec((hp, 1), lambda i: (0, 0)),             # b1 column (resident)
            pl.BlockSpec((hp, 1), lambda i: (0, 0)),             # w2 column (resident)
            pl.BlockSpec(memory_space=pltpu.MemorySpace.SMEM),   # [b2, scale, offset]
        ],
        out_specs=pl.BlockSpec((1, tb), lambda i: (0, i)),       # lane-dense output
        compiler_params=pltpu.CompilerParams(
            dimension_semantics=("parallel",)),
    )(ids, packed["hum"], packed["b1"], packed["w2"], scalars)


# --------------------------- parameter creation ------------------------------
def init_params(key, n_users, n_movies, n_factors=50, hidden=10):
    """Deterministic re-implementation of EmbeddingNet._init() (PyTorch layout)."""
    k_u, k_m, k_w1, k_w2 = jax.random.split(key, 4)

    # embeddings ~ U(-0.05, 0.05)
    u = jax.random.uniform(k_u, (n_users, n_factors), jnp.float32, -0.05, 0.05)
    m = jax.random.uniform(k_m, (n_movies, n_factors), jnp.float32, -0.05, 0.05)

    # hidden Linear(2*n_factors, hidden): xavier_uniform_ weights, bias = 0.01
    n_in = 2 * n_factors
    bound1 = math.sqrt(6.0 / (n_in + hidden))
    w1 = jax.random.uniform(k_w1, (hidden, n_in), jnp.float32, -bound1, bound1)
    b1 = jnp.full((hidden,), 0.01, jnp.float32)

    # fc Linear(hidden, 1): xavier_uniform_ weights, bias = 0.01
    bound2 = math.sqrt(6.0 / (hidden + 1))
    w2 = jax.random.uniform(k_w2, (1, hidden), jnp.float32, -bound2, bound2)
    b2 = jnp.full((1,), 0.01, jnp.float32)

    return dict(u=u, m=m, w1=w1, b1=b1, w2=w2, b2=b2)


def pack_params(raw, table_dtype=jnp.bfloat16):
    """Fold the hidden layer into the tables and pad into TPU-friendly layout."""
    u, m = raw["u"], raw["m"]
    w1, b1, w2, b2 = raw["w1"], raw["b1"], raw["w2"], raw["b2"]

    n_users, f = u.shape
    n_movies = m.shape[0]
    h = w1.shape[0]

    hp = _round_up(h, 16)            # hidden 10 -> 16 (sublane multiple, not 128)
    nup = _round_up(n_users, 128)    # 100 -> 128
    nmp = _round_up(n_movies, 128)   # 200 -> 256

    # Precompute the hidden layer against both tables (f32), then concat + pad.
    hu = w1[:, :f] @ u.T             # (h, n_users)
    hm = w1[:, f:] @ m.T             # (h, n_movies)
    hum = jnp.zeros((hp, nup + nmp), jnp.float32)
    hum = hum.at[:h, :n_users].set(hu)
    hum = hum.at[:h, nup:nup + n_movies].set(hm)

    return dict(
        hum=hum.astype(table_dtype),            # (Hp, NUp+NMp) bf16 resident
        b1=_pad2(b1.reshape(h, 1), hp, 1),      # (Hp, 1) f32 — padded entries 0
        w2=_pad2(w2.reshape(h, 1), hp, 1),      # (Hp, 1) f32 — padded entries 0
        b2=b2.reshape(()),                      # scalar, bundled into SMEM at call
        n_users_pad=nup,                        # static offset of the movie block
    )


# ------------------------------- forward -------------------------------------
def embedding_net_forward(packed, users, movies, minmax=None, block_b=2048):
    """Pallas forward.  users/movies: (B,) int32.  Returns (B, 1) float32."""
    b = users.shape[0]

    # Lane-dense batch tile; keep >= 2 grid steps for big batches so v7x's
    # two TensorCores both get work ("parallel" grid axis).
    b128 = _round_up(b, 128)
    tb = min(block_b, b128)
    if tb == b128 and b128 >= 256:
        tb = _round_up(b128 // 2, 128)
    b_pad = _round_up(b, tb)

    ids = jnp.zeros((2, b_pad), jnp.int32)
    ids = ids.at[0, :b].set(users.astype(jnp.int32))
    ids = ids.at[1, :b].set(movies.astype(jnp.int32))

    if minmax is None:
        scale, offset = 1.0, 0.0
    else:
        min_rating, max_rating = minmax
        scale = max_rating - min_rating + 1
        offset = min_rating - 0.5

    # Runtime SMEM scalars -> changing minmax does not recompile the kernel.
    scalars = jnp.stack([packed["b2"].astype(jnp.float32),
                         jnp.asarray(scale, jnp.float32),
                         jnp.asarray(offset, jnp.float32)])

    out = _mlp_pallas(packed, ids, scalars, block_b=tb)
    return out[0, :b].reshape(b, 1)


def reference_forward(raw, users, movies, minmax=None):
    """Pure-JAX reference (mirrors the PyTorch module at inference)."""
    feat = jnp.concatenate([raw["u"][users], raw["m"][movies]], axis=1)
    h = jnp.maximum(feat @ raw["w1"].T + raw["b1"], 0.0)
    out = jax.nn.sigmoid(h @ raw["w2"].T + raw["b2"])
    if minmax is not None:
        min_rating, max_rating = minmax
        out = out * (max_rating - min_rating + 1) + min_rating - 0.5
    return out


# --------------------------------- main ---------------------------------------
if __name__ == "__main__":
    n_users, n_movies, n_factors, hidden = 100, 200, 50, 10
    batch = 8

    key = jax.random.PRNGKey(0)
    k_params, k_u_idx, k_m_idx = jax.random.split(key, 3)

    raw = init_params(k_params, n_users, n_movies, n_factors, hidden)
    packed = pack_params(raw)

    users = jax.random.randint(k_u_idx, (batch,), 0, n_users, dtype=jnp.int32)
    movies = jax.random.randint(k_m_idx, (batch,), 0, n_movies, dtype=jnp.int32)

    out = embedding_net_forward(packed, users, movies, minmax=(1.0, 5.0))
    out = jax.block_until_ready(out)

    ref = reference_forward(raw, users, movies, minmax=(1.0, 5.0))

    assert out.shape == (batch, 1), out.shape
    assert bool(jnp.all(jnp.isfinite(out)))
    max_err = float(jnp.max(jnp.abs(out - ref)))
    assert max_err < 2e-2, f"mismatch vs reference: {max_err}"
    print("KERNEL_OK")
</pallas_src>

<mosaic_0001>
module attributes {stable_mosaic.version = 11 : i64} {
  func.func @kernel(%arg0: i32, %arg1: memref<2x128xi32, #tpu.memory_space<vmem>>, %arg2: memref<16x384xbf16, #tpu.memory_space<vmem>>, %arg3: memref<16x1xf32, #tpu.memory_space<vmem>>, %arg4: memref<16x1xf32, #tpu.memory_space<vmem>>, %arg5: memref<3xf32, #tpu.memory_space<smem>>, %arg6: memref<1x128xf32, #tpu.memory_space<vmem>>) attributes {dimension_semantics = [#tpu.dimension_semantics<parallel>], iteration_bounds = array<i64: 1>, scalar_prefetch = 0 : i64, scratch_operands = 0 : i64, tpu.core_type = #tpu.core_type<tc>, window_params = [{transform_indices = @transform_0, window_bounds = array<i64: 2, 128>}, {pipeline_mode = #tpu.pipeline_mode<synchronous>, transform_indices = @transform_1, window_bounds = array<i64: 16, 384>}, {pipeline_mode = #tpu.pipeline_mode<synchronous>, transform_indices = @transform_2, window_bounds = array<i64: 16, 1>}, {pipeline_mode = #tpu.pipeline_mode<synchronous>, transform_indices = @transform_3, window_bounds = array<i64: 16, 1>}, {transform_indices = @transform_4, window_bounds = array<i64: 3>}, {transform_indices = @transform_5, window_bounds = array<i64: 1, 128>}]} {
    %c0 = arith.constant 0 : index
    %c0_0 = arith.constant 0 : index
    %0 = vector.load %arg1[%c0, %c0_0] : memref<2x128xi32, #tpu.memory_space<vmem>>, vector<1x128xi32>
    %c1 = arith.constant 1 : index
    %c0_1 = arith.constant 0 : index
    %1 = vector.load %arg1[%c1, %c0_1] : memref<2x128xi32, #tpu.memory_space<vmem>>, vector<1x128xi32>
    %c128_i32 = arith.constant 128 : i32
    %2 = vector.broadcast %c128_i32 : i32 to vector<1x128xi32>
    %3 = arith.addi %1, %2 : vector<1x128xi32>
    %4 = tpu.iota {dimensions = array<i32: 0>} : vector<384x128xi32>
    %5 = vector.broadcast %0 : vector<1x128xi32> to vector<384x128xi32>
    %6 = arith.cmpi eq, %4, %5 : vector<384x128xi32>
    %7 = vector.broadcast %3 : vector<1x128xi32> to vector<384x128xi32>
    %8 = arith.cmpi eq, %4, %7 : vector<384x128xi32>
    %9 = arith.ori %6, %8 : vector<384x128xi1>
    %10 = arith.extui %9 : vector<384x128xi1> to vector<384x128xi32>
    %11 = arith.sitofp %10 : vector<384x128xi32> to vector<384x128xf32>
    %12 = arith.truncf %11 : vector<384x128xf32> to vector<384x128xbf16>
    %c0_2 = arith.constant 0 : index
    %c0_3 = arith.constant 0 : index
    %13 = vector.load %arg2[%c0_2, %c0_3] : memref<16x384xbf16, #tpu.memory_space<vmem>>, vector<16x384xbf16>
    %cst = arith.constant dense<0.000000e+00> : vector<16x128xf32>
    %14 = tpu.matmul %13, %12, %cst {dimension_numbers = #tpu.dot_dimension_numbers<[1], [0], [0], [1], [0, 0, 1, 1], [], []>} : vector<16x384xbf16>, vector<384x128xbf16>, vector<16x128xf32> -> vector<16x128xf32>
    %c0_4 = arith.constant 0 : index
    %c0_5 = arith.constant 0 : index
    %15 = vector.load %arg3[%c0_4, %c0_5] : memref<16x1xf32, #tpu.memory_space<vmem>>, vector<16x1xf32>
    %16 = vector.broadcast %15 : vector<16x1xf32> to vector<16x128xf32>
    %17 = arith.addf %14, %16 : vector<16x128xf32>
    %cst_6 = arith.constant 0.000000e+00 : f32
    %18 = vector.broadcast %cst_6 : f32 to vector<16x128xf32>
    %19 = arith.maximumf %17, %18 : vector<16x128xf32>
    %c0_7 = arith.constant 0 : index
    %c0_8 = arith.constant 0 : index
    %20 = vector.load %arg4[%c0_7, %c0_8] : memref<16x1xf32, #tpu.memory_space<vmem>>, vector<16x1xf32>
    %21 = vector.broadcast %20 : vector<16x1xf32> to vector<16x128xf32>
    %22 = arith.mulf %19, %21 : vector<16x128xf32>
    %cst_9 = arith.constant dense<0.000000e+00> : vector<128xf32>
    %23 = vector.multi_reduction <add>, %22, %cst_9 [0] : vector<16x128xf32> to vector<128xf32>
    %24 = vector.shape_cast %23 : vector<128xf32> to vector<1x128xf32>
    %c0_10 = arith.constant 0 : index
    %25 = memref.load %arg5[%c0_10] : memref<3xf32, #tpu.memory_space<smem>>
    %26 = vector.broadcast %25 : f32 to vector<1x128xf32>
    %27 = arith.addf %24, %26 : vector<1x128xf32>
    %cst_11 = arith.constant 0.000000e+00 : f32
    %28 = vector.broadcast %cst_11 : f32 to vector<1x128xf32>
    %29 = arith.subf %28, %27 : vector<1x128xf32>
    %30 = math.exp %29 : vector<1x128xf32>
    %cst_12 = arith.constant 1.000000e+00 : f32
    %31 = vector.broadcast %cst_12 : f32 to vector<1x128xf32>
    %32 = arith.addf %31, %30 : vector<1x128xf32>
    %cst_13 = arith.constant 1.000000e+00 : f32
    %33 = vector.broadcast %cst_13 : f32 to vector<1x128xf32>
    %34 = arith.divf %33, %32 : vector<1x128xf32>
    %c1_14 = arith.constant 1 : index
    %35 = memref.load %arg5[%c1_14] : memref<3xf32, #tpu.memory_space<smem>>
    %36 = vector.broadcast %35 : f32 to vector<1x128xf32>
    %37 = arith.mulf %34, %36 : vector<1x128xf32>
    %c2 = arith.constant 2 : index
    %38 = memref.load %arg5[%c2] : memref<3xf32, #tpu.memory_space<smem>>
    %39 = vector.broadcast %38 : f32 to vector<1x128xf32>
    %40 = arith.addf %37, %39 : vector<1x128xf32>
    %c0_15 = arith.constant 0 : index
    %c0_16 = arith.constant 0 : index
    %41 = vector.load %arg6[%c0_15, %c0_16] : memref<1x128xf32, #tpu.memory_space<vmem>>, vector<1x128xf32>
    tpu.vector_store %arg6[%c0_15, %c0_16], %40 {strides = array<i32>} : memref<1x128xf32, #tpu.memory_space<vmem>>, vector<1x128xf32>,
    return
  }
  func.func @transform_0(%arg0: i32) -> (i32, i32) {
    %c0_i32 = arith.constant 0 : i32
    %c0_i32_0 = arith.constant 0 : i32
    return %c0_i32, %arg0 : i32, i32
  }
  func.func @transform_1(%arg0: i32) -> (i32, i32) {
    %c0_i32 = arith.constant 0 : i32
    %c0_i32_0 = arith.constant 0 : i32
    %c0_i32_1 = arith.constant 0 : i32
    return %c0_i32, %c0_i32_0 : i32, i32
  }
  func.func @transform_2(%arg0: i32) -> (i32, i32) {
    %c0_i32 = arith.constant 0 : i32
    %c0_i32_0 = arith.constant 0 : i32
    %c0_i32_1 = arith.constant 0 : i32
    return %c0_i32, %c0_i32_0 : i32, i32
  }
  func.func @transform_3(%arg0: i32) -> (i32, i32) {
    %c0_i32 = arith.constant 0 : i32
    %c0_i32_0 = arith.constant 0 : i32
    %c0_i32_1 = arith.constant 0 : i32
    return %c0_i32, %c0_i32_0 : i32, i32
  }
  func.func @transform_4(%arg0: i32) -> i32 {
    %c0_i32 = arith.constant 0 : i32
    %c0_i32_0 = arith.constant 0 : i32
    return %c0_i32 : i32
  }
  func.func @transform_5(%arg0: i32) -> (i32, i32) {
    %c0_i32 = arith.constant 0 : i32
    %c0_i32_0 = arith.constant 0 : i32
    return %c0_i32, %arg0 : i32, i32
  }
}

</mosaic_0001>

<bundles_post_ra>
// kernel: tpu_custom_call.1
= control target key start
LH: loop header
LB: loop body
LE: loop exit
PB: predicated region body
PF: predicated region fallthrough
CT: control target
= control target key end

     0   :  { %10 = vsyncpa [#allocation4], 0  ;;  %s1075_s0 = inlined_call_operand.vmem [shape: s32[2,128], index: 0, kind: input, shape index: {}]   ;;  %s1076_s1 = inlined_call_operand.vmem [shape: bf16[16,384], index: 1, kind: input, shape index: {}]   ;;  %s1077_s2 = inlined_call_operand.vmem [shape: f32[16,1], index: 2, kind: input, shape index: {}]   ;;  %s1078_s3 = inlined_call_operand.vmem [shape: f32[16,1], index: 3, kind: input, shape index: {}]   ;;  %s1079_s4 = inlined_call_operand.vmem [shape: f32[3], index: 4, kind: input, shape index: {}]   ;;  %s1080_s5 = inlined_call_operand.hbm [shape: f32[1,128], index: 5, kind: output, shape index: {}]  }
   0x1   :  { %11 = vsyncpa [#allocation3], 0  ;;  %s26_s20 = sshll.u32 %s1079_s4, 4  ;;  %s27_s20 = int_to_ptr.vmem [resolvable:$true] %s26_s20 }
   0x2   :  { %s696_s21 = scalar_lea.vmem %s27_s20, 16  ;;  %p701_p1 = scmp.lt.s32.totalorder %s27_s20, %s27_s20 }
   0x3   :  { %p697_p0 = scmp.ne.s32.totalorder %s27_s20, %s696_s21  ;;  %p702_p2 = scmp.lt.s32.totalorder %s696_s21, %s696_s21 }
   0x5   :  { %p703_p3 = por %p702_p2, %p701_p1 }
   0x7   :  { %p704_p4 = pnand %p703_p3, %p697_p0 }
   0x9   :  { %707 = shalt.err (!%p704_p4)
}
   0xa   :  { %s734_s22 = smov [#allocation2]  }
   0xb   :  { %29 = dma.vmem_to_smem %s27_s20, 16, %s734_s22, [#allocation4]  }
   0xc   :  { %730 = dma.done.wait [#allocation4], 16  }
   0xd   :  { %731 = vsyncadd [#allocation4], 4294967280 }
   0xe   :  { %33 = sfence }
   0xf   :  { %v36_v0 = vld [vmem:[%s1075_s0 + $0x1] sm:$0x1]  ;;  %v38_v1 = vlaneseq  ;;  %v735_v4 = vmov 0.0   ;;  %v690_v5 = vld [vmem:[%s1076_s1 + $0x4] ss:$12 sps:$4 sm:$0xff]   ;;  %vm736_vm0 = vmmov 0  }
  0x10   :  { %v37_v2 = vadd.s32 128, %v36_v0  ;;  %660 = vmatprep.subr.bf16.mxu1 %v735_v4  ;;  %v785_v6 = vld [vmem:[%s1075_s0] ss:$0 sm:$0xff]  ;;  %676 = vmatprep.mubr.msk.bf16.mxu1 %vm736_vm0, %v735_v4  ;;  %v737_v11 = vmov 0   ;;  %v364_v15 = vld [vmem:[%s1077_s2 + $0x8] sm:$0xff]  ;;  %s627_s12 = sld [smem:[#allocation2 + $0x1]] }
  0x11   :  { %v776_v3 = vshrl.u32 %v38_v1, 7  ;;  %v363_v7 = vld [vmem:[%s1077_s2] sm:$0xff]  ;;  %423 = vmatprep.mubr.bf16.mxu0 %v690_v5  ;;  %686 = vset.pattern.permute.xlu0 %v737_v11  ;;  %v476_v16 = vld [vmem:[%s1078_s3 + $0x8] sm:$0xff]  ;;  %v738_v20 = vmov 1.0|1.0   ;;  %s628_s13 = sld [smem:[#allocation2 + $0x2]] }
  0x12   :  { %v475_v12 = vld [vmem:[%s1078_s3] sm:$0xff]  ;;  %367 = vperm.xlu0 %686, %v363_v7   ;;  %687 = vset.pattern.permute.xlu1 %v737_v11  ;;  %v691_v0 = vld [vmem:[%s1076_s1 + $0x8] ss:$12 sps:$4 sm:$0xff]   ;;  %s739_s14 = smov [#allocation5]  }
  0x13   :  { %v55_v8 = vadd.s32 128, %v776_v3  ;;  %v56_v9 = vadd.s32 136, %v776_v3  ;;  %v141_v10 = vsub.s32 0, %v776_v3  ;;  %v40_v14 = vadd.s32 8, %v776_v3  ;;  %479 = vperm.xlu1 %687, %v475_v12   ;;  %v688_v63 = vld [vmem:[%s1076_s1] ss:$12 sps:$4 sm:$0xff]  }
  0x14   :  { %v71_v17 = vadd.s32 256, %v776_v3  ;;  %vm91_vm6 = vcmp.eq.s32.totalorder %v776_v3, %v785_v6  ;;  %v72_v18 = vadd.s32 264, %v776_v3  ;;  %v57_v19 = vadd.s32 144, %v776_v3  ;;  %s496_s1 = sld [smem:[#allocation2]]  ;;  %s518_s15 = sshll.u32 %s739_s14, 4  ;;  %s519_s15 = int_to_ptr.vmem [resolvable:$true] %s518_s15 }
  0x15   :  { %vm107_vm1 = vcmp.eq.s32.totalorder %v55_v8, %v785_v6  ;;  %v798_v13 = vrot.slane %v37_v2, %v141_v10  ;;  %vm108_vm2 = vcmp.eq.s32.totalorder %v56_v9, %v785_v6  ;;  %vm92_vm9 = vcmp.eq.s32.totalorder %v40_v14, %v785_v6  ;;  %s708_s16 = scalar_lea.vmem %s519_s15, 16  ;;  %s712_s17 = scalar_lea.vmem %s519_s15, 32 }
  0x16   :  { %372 = vperm.xlu0 %686, %v364_v15   ;;  %vm123_vm13 = vcmp.eq.s32.totalorder %v71_v17, %v785_v6  ;;  %v58_v21 = vadd.s32 152, %v776_v3  ;;  %vm124_vm0 = vcmp.eq.s32.totalorder %v72_v18, %v785_v6  ;;  %v41_v22 = vadd.s32 16, %v776_v3  ;;  %p709_p5 = scmp.ne.s32.totalorder %s519_s15, %s708_s16  ;;  %p713_p6 = scmp.lt.s32.totalorder %s519_s15, %s519_s15 }
  0x17   :  { %vm159_vm3 = vcmp.eq.s32.totalorder %v55_v8, %v798_v13  ;;  %vm160_vm4 = vcmp.eq.s32.totalorder %v56_v9, %v798_v13  ;;  %vm143_vm7 = vcmp.eq.s32.totalorder %v776_v3, %v798_v13  ;;  %vm144_vm10 = vcmp.eq.s32.totalorder %v40_v14, %v798_v13  ;;  %484 = vperm.xlu1 %687, %v476_v16   ;;  %p714_p7 = scmp.lt.s32.totalorder %s712_s17, %s708_s16 }
  0x18   :  { %vm207_vm5 = vmor %vm107_vm1, %vm159_vm3  ;;  %vm175_vm14 = vcmp.eq.s32.totalorder %v71_v17, %v798_v13  ;;  %vm176_vm1 = vcmp.eq.s32.totalorder %v72_v18, %v798_v13  ;;  %v42_v23 = vadd.s32 24, %v776_v3  ;;  %v73_v24 = vadd.s32 272, %v776_v3 }
  0x19   :  { %vm208_vm8 = vmor %vm108_vm2, %vm160_vm4  ;;  %vm109_vm4 = vcmp.eq.s32.totalorder %v57_v19, %v785_v6  ;;  %v74_v25 = vadd.s32 280, %v776_v3  ;;  %v59_v26 = vadd.s32 160, %v776_v3  ;;  %v60_v27 = vadd.s32 168, %v776_v3  ;;  %p715_p8 = por %p714_p7, %p713_p6 }
  0x1a   :  { %vm595_vm11 = vmpackc.low %vm208_vm8, %vm207_vm5  ;;  %vm161_vm5 = vcmp.eq.s32.totalorder %v57_v19, %v798_v13  ;;  %vm162_vm8 = vcmp.eq.s32.totalorder %v58_v21, %v798_v13  ;;  %v43_v28 = vadd.s32 32, %v776_v3  ;;  %v44_v29 = vadd.s32 40, %v776_v3 }
  0x1b   :  { %629 = vmatprep.subr.msk.bf16.mxu0 %vm595_vm11, %v738_v20  ;;  %vm191_vm12 = vmor %vm91_vm6, %vm143_vm7  ;;  %vm110_vm7 = vcmp.eq.s32.totalorder %v58_v21, %v785_v6  ;;  %vm93_vm11 = vcmp.eq.s32.totalorder %v41_v22, %v785_v6  ;;  %v75_v30 = vadd.s32 288, %v776_v3  ;;  %v76_v31 = vadd.s32 296, %v776_v3  ;;  %p716_p9 = pnand %p715_p8, %p709_p5 }
  0x1c   :  { %vm192_vm15 = vmor %vm92_vm9, %vm144_vm10  ;;  %v61_v32 = vadd.s32 176, %v776_v3  ;;  %v62_v33 = vadd.s32 184, %v776_v3  ;;  %v45_v34 = vadd.s32 48, %v776_v3  ;;  %v46_v35 = vadd.s32 56, %v776_v3 }
  0x1d   :  { %vm579_vm2 = vmpackc.low %vm192_vm15, %vm191_vm12  ;;  %vm145_vm12 = vcmp.eq.s32.totalorder %v41_v22, %v798_v13  ;;  %vm146_vm15 = vcmp.eq.s32.totalorder %v42_v23, %v798_v13  ;;  %v77_v36 = vadd.s32 304, %v776_v3  ;;  %v78_v37 = vadd.s32 312, %v776_v3 }
  0x1e   :  { %630 = vmatpush3.bf16.msk.msra.mxu0 %vm579_vm2, %v738_v20  ;;  %vm223_vm3 = vmor %vm123_vm13, %vm175_vm14  ;;  %vm94_vm14 = vcmp.eq.s32.totalorder %v42_v23, %v785_v6  ;;  %vm125_vm2 = vcmp.eq.s32.totalorder %v73_v24, %v785_v6  ;;  %v879_v38 = vadd.s32 240, %v776_v3  ;;  %v882_v39 = vadd.s32 248, %v776_v3 }
  0x1f   :  { %vm224_vm6 = vmor %vm124_vm0, %vm176_vm1  ;;  %v885_v40 = vadd.s32 112, %v776_v3  ;;  %v63_v41 = vadd.s32 192, %v776_v3  ;;  %v64_v43 = vadd.s32 200, %v776_v3  ;;  %v909_v44 = vadd.s32 120, %v776_v3 }
  0x20   :  { %vm611_vm9 = vmpackc.low %vm224_vm6, %vm223_vm3  ;;  %vm177_vm3 = vcmp.eq.s32.totalorder %v73_v24, %v798_v13  ;;  %vm178_vm6 = vcmp.eq.s32.totalorder %v74_v25, %v798_v13  ;;  %v919_v45 = vadd.s32 368, %v776_v3  ;;  %v922_v46 = vadd.s32 376, %v776_v3 }
  0x21   :  { %661 = vmatpush3.bf16.msk.msra.mxu1 %vm611_vm9, %v738_v20  ;;  %vm209_vm10 = vmor %vm109_vm4, %vm161_vm5  ;;  %vm126_vm5 = vcmp.eq.s32.totalorder %v74_v25, %v785_v6  ;;  %vm111_vm9 = vcmp.eq.s32.totalorder %v59_v26, %v785_v6  ;;  %v47_v47 = vadd.s32 64, %v776_v3  ;;  %v48_v48 = vadd.s32 72, %v776_v3 }
  0x22   :  { %vm210_vm13 = vmor %vm110_vm7, %vm162_vm8  ;;  %662 = vmatprep.subr.bf16.mxu1 %v735_v4  ;;  %v79_v49 = vadd.s32 320, %v776_v3  ;;  %v80_v50 = vadd.s32 328, %v776_v3  ;;  %v65_v51 = vadd.s32 208, %v776_v3  ;;  %v66_v52 = vadd.s32 216, %v776_v3 }
  0x23   :  { %vm597_vm0 = vmpackc.low %vm210_vm13, %vm209_vm10  ;;  %vm163_vm10 = vcmp.eq.s32.totalorder %v59_v26, %v798_v13  ;;  %vm164_vm13 = vcmp.eq.s32.totalorder %v60_v27, %v798_v13  ;;  %v49_v53 = vadd.s32 80, %v776_v3  ;;  %v50_v54 = vadd.s32 88, %v776_v3 }
  0x24   :  { %631 = vmatprep.subr.msk.bf16.mxu0 %vm597_vm0, %v738_v20  ;;  %vm193_vm1 = vmor %vm93_vm11, %vm145_vm12  ;;  %vm112_vm12 = vcmp.eq.s32.totalorder %v60_v27, %v785_v6  ;;  %vm95_vm0 = vcmp.eq.s32.totalorder %v43_v28, %v785_v6  ;;  %v81_v55 = vadd.s32 336, %v776_v3  ;;  %v82_v56 = vadd.s32 344, %v776_v3 }
  0x25   :  { %vm194_vm4 = vmor %vm94_vm14, %vm146_vm15  ;;  %v67_v57 = vadd.s32 224, %v776_v3  ;;  %v68_v58 = vadd.s32 232, %v776_v3  ;;  %v51_v59 = vadd.s32 96, %v776_v3  ;;  %v52_v60 = vadd.s32 104, %v776_v3 }
  0x26   :  { %vm581_vm7 = vmpackc.low %vm194_vm4, %vm193_vm1  ;;  %vm147_vm1 = vcmp.eq.s32.totalorder %v43_v28, %v798_v13  ;;  %vm148_vm4 = vcmp.eq.s32.totalorder %v44_v29, %v798_v13  ;;  %v83_v61 = vadd.s32 352, %v776_v3  ;;  %v84_v62 = vadd.s32 360, %v776_v3 }
  0x27   :  { %632 = vmatpush3.bf16.msk.msra.mxu0 %vm581_vm7, %v738_v20  ;;  %vm225_vm8 = vmor %vm125_vm2, %vm177_vm3  ;;  %vm96_vm3 = vcmp.eq.s32.totalorder %v44_v29, %v785_v6  ;;  %vm127_vm7 = vcmp.eq.s32.totalorder %v75_v30, %v785_v6  ;;  %v497_v29 = vstv %s496_s1 }
  0x28   :  { %vm226_vm11 = vmor %vm126_vm5, %vm178_vm6 }
  0x29   :  { %vm613_vm14 = vmpackc.low %vm226_vm11, %vm225_vm8  ;;  %vm179_vm8 = vcmp.eq.s32.totalorder %v75_v30, %v798_v13  ;;  %vm180_vm11 = vcmp.eq.s32.totalorder %v76_v31, %v798_v13 }
  0x2a   :  { %663 = vmatpush3.bf16.msk.msra.mxu1 %vm613_vm14, %v738_v20  ;;  %vm211_vm15 = vmor %vm111_vm9, %vm163_vm10  ;;  %vm128_vm10 = vcmp.eq.s32.totalorder %v76_v31, %v785_v6  ;;  %vm113_vm14 = vcmp.eq.s32.totalorder %v61_v32, %v785_v6 }
  0x2b   :  { %vm212_vm2 = vmor %vm112_vm12, %vm164_vm13  ;;  %664 = vmatprep.subr.bf16.mxu1 %v735_v4 }
  0x2c   :  { %vm599_vm5 = vmpackc.low %vm212_vm2, %vm211_vm15  ;;  %vm114_vm15 = vcmp.eq.s32.totalorder %v62_v33, %v785_v6 }
  0x2d   :  { %633 = vmatprep.subr.msk.bf16.mxu0 %vm599_vm5, %v738_v20  ;;  %vm195_vm6 = vmor %vm95_vm0, %vm147_vm1  ;;  %vm165_vm0 = vcmp.eq.s32.totalorder %v61_v32, %v798_v13  ;;  %vm166_vm1 = vcmp.eq.s32.totalorder %v62_v33, %v798_v13  ;;  %vm149_vm5 = vcmp.eq.s32.totalorder %v45_v34, %v798_v13 }
  0x2e   :  { %vm196_vm9 = vmor %vm96_vm3, %vm148_vm4  ;;  %vm97_vm4 = vcmp.eq.s32.totalorder %v45_v34, %v785_v6 }
  0x2f   :  { %vm583_vm12 = vmpackc.low %vm196_vm9, %vm195_vm6  ;;  %vm129_vm9 = vcmp.eq.s32.totalorder %v77_v36, %v785_v6 }
  0x30   :  { %634 = vmatpush3.bf16.msk.msra.mxu0 %vm583_vm12, %v738_v20  ;;  %vm227_vm13 = vmor %vm127_vm7, %vm179_vm8  ;;  %vm98_vm7 = vcmp.eq.s32.totalorder %v46_v35, %v785_v6  ;;  %vm150_vm8 = vcmp.eq.s32.totalorder %v46_v35, %v798_v13  ;;  %vm188_vm12 = vcmp.eq.s32.totalorder %v84_v62, %v798_v13 }
  0x31   :  { %vm228_vm2 = vmor %vm128_vm10, %vm180_vm11  ;;  %vm121_vm11 = vcmp.eq.s32.totalorder %v879_v38, %v785_v6 }
  0x32   :  { %vm615_vm3 = vmpackc.low %vm228_vm2, %vm227_vm13  ;;  %vm181_vm2 = vcmp.eq.s32.totalorder %v77_v36, %v798_v13  ;;  %vm167_vm13 = vcmp.eq.s32.totalorder %v63_v41, %v798_v13  ;;  %v506_v36 = vstv %s627_s12 }
  0x33   :  { %665 = vmatpush3.bf16.msk.msra.mxu1 %vm615_vm3, %v738_v20  ;;  %vm891_vm6 = vmor %vm113_vm14, %vm165_vm0  ;;  %vm130_vm0 = vcmp.eq.s32.totalorder %v78_v37, %v785_v6  ;;  %vm182_vm3 = vcmp.eq.s32.totalorder %v78_v37, %v798_v13 }
  0x34   :  { %vm214_vm10 = vmor %vm114_vm15, %vm166_vm1  ;;  %666 = vmatprep.subr.bf16.mxu1 %v735_v4 }
  0x35   :  { %vm601_vm14 = vmpackc.low %vm214_vm10, %vm891_vm6  ;;  %vm100_vm10 = vcmp.eq.s32.totalorder %v48_v48, %v785_v6 }
  0x36   :  { %635 = vmatprep.subr.msk.bf16.mxu0 %vm601_vm14, %v738_v20  ;;  %vm197_vm1 = vmor %vm97_vm4, %vm149_vm5 }
  0x37   :  { %vm198_vm14 = vmor %vm98_vm7, %vm150_vm8  ;;  %vm115_vm8 = vcmp.eq.s32.totalorder %v63_v41, %v785_v6 }
  0x38   :  { %vm585_vm15 = vmpackc.low %vm198_vm14, %vm197_vm1  ;;  %vm116_vm1 = vcmp.eq.s32.totalorder %v64_v43, %v785_v6  ;;  %vm168_vm14 = vcmp.eq.s32.totalorder %v64_v43, %v798_v13 }
  0x39   :  { %636 = vmatpush3.bf16.msk.msra.mxu0 %vm585_vm15, %v738_v20  ;;  %vm229_vm7 = vmor %vm129_vm9, %vm181_vm2  ;;  %vm99_vm15 = vcmp.eq.s32.totalorder %v47_v47, %v785_v6  ;;  %vm151_vm2 = vcmp.eq.s32.totalorder %v47_v47, %v798_v13 }
  0x3a   :  { %vm230_vm4 = vmor %vm130_vm0, %vm182_vm3  ;;  %vm152_vm0 = vcmp.eq.s32.totalorder %v48_v48, %v798_v13 }
  0x3b   :  { %vm617_vm6 = vmpackc.low %vm230_vm4, %vm229_vm7  ;;  %vm183_vm4 = vcmp.eq.s32.totalorder %v79_v49, %v798_v13 }
  0x3c   :  { %667 = vmatpush3.bf16.msk.msra.mxu1 %vm617_vm6, %v738_v20  ;;  %vm215_vm9 = vmor %vm115_vm8, %vm167_vm13  ;;  %vm131_vm13 = vcmp.eq.s32.totalorder %v79_v49, %v785_v6  ;;  %vm132_vm8 = vcmp.eq.s32.totalorder %v80_v50, %v785_v6 }
  0x3d   :  { %vm216_vm5 = vmor %vm116_vm1, %vm168_vm14  ;;  %668 = vmatprep.subr.bf16.mxu1 %v735_v4  ;;  %vm184_vm1 = vcmp.eq.s32.totalorder %v80_v50, %v798_v13 }
  0x3e   :  { %vm603_vm3 = vmpackc.low %vm216_vm5, %vm215_vm9  ;;  %vm117_vm9 = vcmp.eq.s32.totalorder %v65_v51, %v785_v6 }
  0x3f   :  { %637 = vmatprep.subr.msk.bf16.mxu0 %vm603_vm3, %v738_v20  ;;  %vm199_vm6 = vmor %vm99_vm15, %vm151_vm2  ;;  %vm169_vm15 = vcmp.eq.s32.totalorder %v65_v51, %v798_v13  ;;  %vm118_vm3 = vcmp.eq.s32.totalorder %v66_v52, %v785_v6 }
  0x40   :  { %vm200_vm7 = vmor %vm100_vm10, %vm152_vm0  ;;  %vm170_vm10 = vcmp.eq.s32.totalorder %v66_v52, %v798_v13 }
  0x41   :  { %vm587_vm14 = vmpackc.low %vm200_vm7, %vm199_vm6  ;;  %vm101_vm7 = vcmp.eq.s32.totalorder %v49_v53, %v785_v6 }
  0x42   :  { %638 = vmatpush3.bf16.msk.msra.mxu0 %vm587_vm14, %v738_v20  ;;  %vm231_vm5 = vmor %vm131_vm13, %vm183_vm4  ;;  %vm153_vm13 = vcmp.eq.s32.totalorder %v49_v53, %v798_v13  ;;  %vm102_vm14 = vcmp.eq.s32.totalorder %v50_v54, %v785_v6 }
  0x43   :  { %vm232_vm2 = vmor %vm132_vm8, %vm184_vm1  ;;  %vm154_vm8 = vcmp.eq.s32.totalorder %v50_v54, %v798_v13 }
  0x44   :  { %vm619_vm0 = vmpackc.low %vm232_vm2, %vm231_vm5 }
  0x45   :  { %669 = vmatpush3.bf16.msk.msra.mxu1 %vm619_vm0, %v738_v20  ;;  %vm217_vm6 = vmor %vm117_vm9, %vm169_vm15  ;;  %vm133_vm9 = vcmp.eq.s32.totalorder %v81_v55, %v785_v6  ;;  %vm185_vm15 = vcmp.eq.s32.totalorder %v81_v55, %v798_v13 }
  0x46   :  { %vm218_vm4 = vmor %vm118_vm3, %vm170_vm10  ;;  %670 = vmatprep.subr.bf16.mxu1 %v735_v4  ;;  %vm134_vm3 = vcmp.eq.s32.totalorder %v82_v56, %v785_v6  ;;  %vm186_vm10 = vcmp.eq.s32.totalorder %v82_v56, %v798_v13 }
  0x47   :  { %vm605_vm1 = vmpackc.low %vm218_vm4, %vm217_vm6  ;;  %vm119_vm4 = vcmp.eq.s32.totalorder %v67_v57, %v785_v6 }
  0x48   :  { %639 = vmatprep.subr.msk.bf16.mxu0 %vm605_vm1, %v738_v20  ;;  %vm201_vm5 = vmor %vm101_vm7, %vm153_vm13  ;;  %vm171_vm7 = vcmp.eq.s32.totalorder %v67_v57, %v798_v13  ;;  %vm120_vm1 = vcmp.eq.s32.totalorder %v68_v58, %v785_v6 }
  0x49   :  { %vm202_vm2 = vmor %vm102_vm14, %vm154_vm8  ;;  %vm172_vm14 = vcmp.eq.s32.totalorder %v68_v58, %v798_v13 }
  0x4a   :  { %vm589_vm0 = vmpackc.low %vm202_vm2, %vm201_vm5  ;;  %vm103_vm2 = vcmp.eq.s32.totalorder %v51_v59, %v785_v6 }
  0x4b   :  { %640 = vmatpush3.bf16.msk.msra.mxu0 %vm589_vm0, %v738_v20  ;;  %vm233_vm6 = vmor %vm133_vm9, %vm185_vm15  ;;  %vm155_vm9 = vcmp.eq.s32.totalorder %v51_v59, %v798_v13  ;;  %vm104_vm0 = vcmp.eq.s32.totalorder %v52_v60, %v785_v6 }
  0x4c   :  { %vm234_vm13 = vmor %vm134_vm3, %vm186_vm10  ;;  %vm156_vm3 = vcmp.eq.s32.totalorder %v52_v60, %v798_v13 }
  0x4d   :  { %vm621_vm8 = vmpackc.low %vm234_vm13, %vm233_vm6  ;;  %vm135_vm13 = vcmp.eq.s32.totalorder %v83_v61, %v785_v6 }
  0x4e   :  { %671 = vmatpush3.bf16.msk.msra.mxu1 %vm621_vm8, %v738_v20  ;;  %vm219_vm5 = vmor %vm119_vm4, %vm171_vm7  ;;  %vm187_vm4 = vcmp.eq.s32.totalorder %v83_v61, %v798_v13  ;;  %vm136_vm8 = vcmp.eq.s32.totalorder %v84_v62, %v785_v6 }
  0x4f   :  { %vm220_vm15 = vmor %vm120_vm1, %vm172_vm14  ;;  %672 = vmatprep.subr.bf16.mxu1 %v735_v4 }
  0x50   :  { %vm607_vm10 = vmpackc.low %vm220_vm15, %vm219_vm5  ;;  %vm1083_vm15 = vcmp.eq.s32.totalorder %v879_v38, %v798_v13  ;;  %v509_v38 = vstv %s628_s13 }
  0x51   :  { %641 = vmatprep.subr.msk.bf16.mxu0 %vm607_vm10, %v738_v20  ;;  %vm203_vm6 = vmor %vm103_vm2, %vm155_vm9  ;;  %vm122_vm2 = vcmp.eq.s32.totalorder %v882_v39, %v785_v6 }
  0x52   :  { %vm204_vm7 = vmor %vm104_vm0, %vm156_vm3  ;;  %vm1084_vm3 = vcmp.eq.s32.totalorder %v882_v39, %v798_v13 }
  0x53   :  { %vm591_vm1 = vmpackc.low %vm204_vm7, %vm203_vm6  ;;  %vm1087_vm7 = vcmp.eq.s32.totalorder %v909_v44, %v798_v13 }
  0x54   :  { %642 = vmatpush3.bf16.msk.msra.mxu0 %vm591_vm1, %v738_v20  ;;  %vm235_vm14 = vmor %vm135_vm13, %vm187_vm4  ;;  %vm1086_vm13 = vcmp.eq.s32.totalorder %v885_v40, %v785_v6 }
  0x55   :  { %vm236_vm5 = vmor %vm136_vm8, %vm188_vm12  ;;  %vm1085_vm12 = vcmp.eq.s32.totalorder %v885_v40, %v798_v13 }
  0x56   :  { %vm623_vm9 = vmpackc.low %vm236_vm5, %vm235_vm14  ;;  %vm1089_vm14 = vcmp.eq.s32.totalorder %v919_v45, %v798_v13  ;;  %vm1090_vm5 = vcmp.eq.s32.totalorder %v919_v45, %v785_v6 }
  0x57   :  { %673 = vmatpush3.bf16.msk.msra.mxu1 %vm623_vm9, %v738_v20  ;;  %vm221_vm0 = vmor %vm121_vm11, %vm1083_vm15  ;;  %vm1088_vm11 = vcmp.eq.s32.totalorder %v909_v44, %v785_v6  ;;  %vm1091_vm9 = vcmp.eq.s32.totalorder %v922_v46, %v798_v13  ;;  %vm1092_vm15 = vcmp.eq.s32.totalorder %v922_v46, %v785_v6 }
  0x58   :  { %vm222_vm10 = vmor %vm122_vm2, %vm1084_vm3  ;;  %674 = vmatprep.subr.bf16.mxu1 %v735_v4 }
  0x59   :  { %vm609_vm6 = vmpackc.low %vm222_vm10, %vm221_vm0 }
  0x5a   :  { %643 = vmatprep.subr.msk.bf16.mxu0 %vm609_vm6, %v738_v20  ;;  %vm205_vm4 = vmor %vm1086_vm13, %vm1085_vm12 }
  0x5b   :  { %vm206_vm8 = vmor %vm1088_vm11, %vm1087_vm7 }
  0x5c   :  { %vm593_vm1 = vmpackc.low %vm206_vm8, %vm205_vm4 }
  0x5d   :  { %644 = vmatpush3.bf16.msk.msra.mxu0 %vm593_vm1, %v738_v20  ;;  %vm237_vm2 = vmor %vm1090_vm5, %vm1089_vm14 }
  0x5e   :  { %vm238_vm0 = vmor %vm1092_vm15, %vm1091_vm9 }
  0x5f   :  { %vm625_vm3 = vmpackc.low %vm238_vm0, %vm237_vm2 }
  0x60   :  { %675 = vmatpush3.bf16.msk.msra.mxu1 %vm625_vm3, %v738_v20  ;;  %424 = vmatmul.mubr.bf16.vlgmr.msra.gmra.mrb[0].mxu0 %v688_v63 }
  0x63   :  { %677 = vmatmul.mubr.bf16.vlgmr.msra.gmra.mrb[0].mxu1 %v691_v0 }
  0x91   :  { %v368_v1 = vpop.permute.xlu0 %367 }
  0x92   :  { %v480_v12 = vpop.permute.xlu1 %479 }
  0x95   :  { %v373_v9 = vpop.permute.xlu0 %372 }
  0x96   :  { %v485_v20 = vpop.permute.xlu1 %484 }
 0x133   :  { %v645_v2 = vpop.f32.mrb[0].mxu0 }
 0x134   :  { %v646_v3 = vpop.f32.mrb[1].mxu0 }
 0x135   :  { %v647_v4 = vadd.f32 %v646_v3, %v645_v2  ;;  %v648_v5 = vpop.f32.mrb[2].mxu0 }
 0x136   :  { %v466_v7 = vpop.f32.mrb[0].mxu1  ;;  %v649_v8 = vpop.f32.mrb[3].mxu0 }
 0x137   :  { %v426_v10 = vadd.f32 %v647_v4, %v368_v1  ;;  %v650_v6 = vadd.f32 %v649_v8, %v648_v5  ;;  %v678_v11 = vpop.f32.mrb[1].mxu1 }
 0x138   :  { %v469_v13 = vpop.f32.mrb[2].mxu1 }
 0x139   :  { %v467_v14 = vadd.f32 %v466_v7, %v426_v10  ;;  %v429_v15 = vadd.f32 %v650_v6, %v373_v9  ;;  %v679_v16 = vpop.f32.mrb[3].mxu1 }
 0x13b   :  { %v473_v17 = vmax.f32 %v467_v14, 0.0  ;;  %v470_v18 = vadd.f32 %v469_v13, %v429_v15 }
 0x13d   :  { %v474_v19 = vmax.f32 %v470_v18, 0.0  ;;  %v487_v21 = vmul.f32 %v480_v12, %v473_v17 }
 0x13f   :  { %v488_v22 = vmul.f32 %v485_v20, %v474_v19 }
 0x141   :  { %v489_v23 = vadd.f32 %v488_v22, %v487_v21 }
 0x143   :  { %v490_v24 = vrot.slane %v489_v23, 4 }
 0x145   :  { %v491_v25 = vadd.f32 %v490_v24, %v489_v23 }
 0x147   :  { %v492_v26 = vrot.slane %v491_v25, 2 }
 0x149   :  { %v493_v27 = vadd.f32 %v492_v26, %v491_v25 }
 0x14b   :  { %v494_v28 = vrot.slane %v493_v27, 1 }
 0x14d   :  { %v495_v30 = vadd.f32 %v494_v28, %v493_v27 }
 0x14f   :  { %v498_v31 = vadd.f32 %v497_v29, %v495_v30 }
 0x151   :  { %v499_v32 = vsub.f32 0.0, %v498_v31 }
 0x153   :  { %v500_v33 = vmul.f32 1.442695, %v499_v32 }
 0x155   :  { %692 = vpow2.f32 %v500_v33 }
 0x15f   :  { %v693_v34 = vpop.eup %692 }
 0x160   :  { %v502_v35 = vadd.f32 1.0, %v693_v34 }
 0x162   :  { %694 = vrcp.f32 %v502_v35 }
 0x16c   :  { %v695_v37 = vpop.eup %694 }
 0x16d   :  { %v507_v39 = vmul.f32 %v695_v37, %v506_v36 }
 0x16f   :  { %v510_v40 = vadd.f32 %v509_v38, %v507_v39 }
 0x171   :  { %511 = vst [vmem:[#allocation5] sm:$0x1] %v510_v40 }
 0x172   :  { %719 = shalt.err (!%p716_p9)
}
 0x173   :  { %s720_s20 = scalar_lea.hbm %s1080_s5, 16 }
 0x174   :  { %p721_p10 = scmp.ne.s32.totalorder %s1080_s5, %s720_s20  ;;  %p724_p11 = scmp.lt.u32.totalorder %s720_s20, %s1080_s5 }
 0x176   :  { %p726_p12 = pnand %p724_p11, %p721_p10 }
 0x178   :  { %729 = shalt.err (!%p726_p12)
}
 0x179   :  { %521 = dma.vmem_to_hbm [thread:$0]  %s519_s15, 16, %s1080_s5, [#allocation3]  }
 0x17a   :  { %732 = dma.done.wait [#allocation3], 16  }
 0x17b   :  { %733 = vsyncadd [#allocation3], 4294967280 }
 0x17c   :  { %525 = vsyncpa [#allocation3], 1 }
 0x17d   :  { %526 = vsyncpa [#allocation4], 1 }

</bundles_post_ra>
